<compile_context>
chip_gen: v5e
topology: v5e:2x2
jax: 0.10.0
libtpu: 0.0.40
codegen_flags: <defaults>
</compile_context>

<pallas_src>
import jax
import jax.numpy as jnp
from jax.experimental import pallas as pl
from jax.experimental.pallas import tpu as pltpu


def _bahar_ff_kernel(xT_ref, w1_ref, b1_ref, w2_ref, b2_ref, w3_ref, b3_ref,
                     oT_ref):
    # xT: (D_in, block_b) bf16; wi: (fan_out, fan_in) bf16; bi: (fan_out, 1) f32.
    xT = xT_ref[...]
    w1 = w1_ref[...]
    w2 = w2_ref[...]
    w3 = w3_ref[...]
    b1 = b1_ref[...]
    b2 = b2_ref[...]
    b3 = b3_ref[...]

    def _sigmoid(h):
        # tanh form: a single EUP transcendental per element instead of
        # exp + full-precision divide (EUP has one VLIW slot on all chips).
        return 0.5 * (jnp.tanh(0.5 * h) + 1.0)

    # Layer 1: (H1, D_in) @ (D_in, block_b) -> (H1, block_b), f32 accumulate.
    h1 = jnp.dot(w1, xT, preferred_element_type=jnp.float32) + b1
    h1 = _sigmoid(h1).astype(w2.dtype)

    # Layer 2: (H2, H1) @ (H1, block_b) -> (H2, block_b).
    h2 = jnp.dot(w2, h1, preferred_element_type=jnp.float32) + b2
    h2 = _sigmoid(h2).astype(w3.dtype)

    # Layer 3: (D_out, H2) @ (H2, block_b) -> (D_out, block_b).
    out = jnp.dot(w3, h2, preferred_element_type=jnp.float32) + b3
    # Lane dim = block_b (>=128-aligned or full batch): unmasked, lane-dense stores.
    oT_ref[...] = out.astype(oT_ref.dtype)


def _pick_block_b(batch):
    """Lane-axis batch tile.

    Small batches: one full tile (block == full lane extent is always legal).
    Large batches: an even number of tiles (>=2) so v7x's two TensorCores get
    balanced work, each tile a multiple of 256 lanes (full MXU column groups
    on v6e/v7x; also 128-aligned for v5e), capped so VMEM stays comfortable
    on every chip generation.
    """
    if batch <= 512:
        return batch
    cap = 8192        # per-tile x/out/intermediates stay a few MiB even on v5e
    lane_mult = 256
    n_tiles = 2
    while True:
        bb = pl.cdiv(batch, n_tiles)
        bb = pl.cdiv(bb, lane_mult) * lane_mult
        if bb <= cap:
            return bb
        n_tiles += 2


def bahar_ff(x, w1, b1, w2, b2, w3, b3, *, block_b=None,
             compute_dtype=jnp.bfloat16):
    """Fused forward pass.

    x: (B, D_in); wi: PyTorch orientation (fan_out, fan_in); bi: (fan_out,).
    Returns (B, D_out) in x.dtype.
    """
    B, d_in = x.shape
    h1 = w1.shape[0]
    h2 = w2.shape[0]
    d_out = w3.shape[0]

    if block_b is None:
        block_b = _pick_block_b(B)
    assert block_b == B or block_b % 128 == 0, \
        "block_b must equal B or be a multiple of 128 (lane axis)"

    out_dtype = x.dtype

    # Transposed formulation: batch on the lane/N axis.  The transpose and the
    # bf16 cast fuse into one small HBM pass (kernel is MXU-bound by ~30x over
    # HBM, so this wrapper plumbing is noise).
    xT = x.T.astype(compute_dtype)                      # (d_in, B)
    w1c = w1.astype(compute_dtype)
    w2c = w2.astype(compute_dtype)
    w3c = w3.astype(compute_dtype)
    b1c = b1.reshape(h1, 1).astype(jnp.float32)
    b2c = b2.reshape(h2, 1).astype(jnp.float32)
    b3c = b3.reshape(d_out, 1).astype(jnp.float32)

    grid = (pl.cdiv(B, block_b),)

    itemsize = jnp.dtype(compute_dtype).itemsize
    cost = pl.CostEstimate(
        flops=2 * B * (d_in * h1 + h1 * h2 + h2 * d_out),
        transcendentals=B * (h1 + h2),
        bytes_accessed=(B * d_in * itemsize
                        + (d_in * h1 + h1 * h2 + h2 * d_out) * itemsize
                        + (h1 + h2 + d_out) * 4
                        + B * d_out * jnp.dtype(out_dtype).itemsize),
    )

    outT = pl.pallas_call(
        _bahar_ff_kernel,
        out_shape=jax.ShapeDtypeStruct((d_out, B), out_dtype),
        grid_spec=pltpu.PrefetchScalarGridSpec(
            num_scalar_prefetch=0,
            grid=grid,
            in_specs=[
                # activations: batch-tiled along the lane axis
                pl.BlockSpec((d_in, block_b), lambda i: (0, i)),
                # weights / biases: full arrays, resident across the grid
                pl.BlockSpec((h1, d_in), lambda i: (0, 0)),
                pl.BlockSpec((h1, 1), lambda i: (0, 0)),
                pl.BlockSpec((h2, h1), lambda i: (0, 0)),
                pl.BlockSpec((h2, 1), lambda i: (0, 0)),
                pl.BlockSpec((d_out, h2), lambda i: (0, 0)),
                pl.BlockSpec((d_out, 1), lambda i: (0, 0)),
            ],
            out_specs=pl.BlockSpec((d_out, block_b), lambda i: (0, i)),
        ),
        compiler_params=pltpu.CompilerParams(
            dimension_semantics=("parallel",),
        ),
        cost_estimate=cost,
    )(xT, w1c, b1c, w2c, b2c, w3c, b3c)

    # Back to the caller's (B, D_out) layout; tiny (B x 16) pass.
    return outT.T


def _init_linear(key, fan_in, fan_out, dtype=jnp.float32):
    # PyTorch nn.Linear default init: U(-1/sqrt(fan_in), 1/sqrt(fan_in)).
    # Weight kept in PyTorch orientation (fan_out, fan_in), bias (fan_out,).
    kw, kb = jax.random.split(key)
    bound = 1.0 / jnp.sqrt(jnp.float32(fan_in))
    w = jax.random.uniform(kw, (fan_out, fan_in), dtype, -bound, bound)
    b = jax.random.uniform(kb, (fan_out,), dtype, -bound, bound)
    return w, b


def _ref_forward(x, w1, b1, w2, b2, w3, b3):
    # Pure-JAX f32 reference (PyTorch semantics: x @ W.T + b).
    h = jax.nn.sigmoid(x @ w1.T + b1)
    h = jax.nn.sigmoid(h @ w2.T + b2)
    return h @ w3.T + b3


if __name__ == "__main__":
    # BaharFF(inputSize=32, hidden_size_1=64, hidden_size_2=48, outputSize=16)
    D_IN, H1, H2, D_OUT = 32, 64, 48, 16

    key = jax.random.PRNGKey(0)
    kx, k1, k2, k3, kx2, kx3 = jax.random.split(key, 6)

    w1, b1 = _init_linear(k1, D_IN, H1)
    w2, b2 = _init_linear(k2, H1, H2)
    w3, b3 = _init_linear(k3, H2, D_OUT)

    fwd = jax.jit(bahar_ff)

    # --- small batch (single full tile) ---
    B = 8
    x = jax.random.normal(kx, (B, D_IN), jnp.float32)
    out = jax.block_until_ready(fwd(x, w1, b1, w2, b2, w3, b3))
    ref = _ref_forward(x, w1, b1, w2, b2, w3, b3)
    assert out.shape == (B, D_OUT)
    # bf16 matmul operands with f32 accumulation -> loosened tolerance.
    assert jnp.allclose(out, ref, atol=3e-2, rtol=3e-2)

    # --- larger batch: 2 even tiles of 1024 lanes (multi-step parallel grid) ---
    B2 = 2048
    x2 = jax.random.normal(kx2, (B2, D_IN), jnp.float32)
    out2 = jax.block_until_ready(fwd(x2, w1, b1, w2, b2, w3, b3))
    ref2 = _ref_forward(x2, w1, b1, w2, b2, w3, b3)
    assert out2.shape == (B2, D_OUT)
    assert jnp.allclose(out2, ref2, atol=3e-2, rtol=3e-2)

    # --- ragged batch: partial last tile (block_b=512, B=600) ---
    B3 = 600
    x3 = jax.random.normal(kx3, (B3, D_IN), jnp.float32)
    out3 = jax.block_until_ready(fwd(x3, w1, b1, w2, b2, w3, b3))
    ref3 = _ref_forward(x3, w1, b1, w2, b2, w3, b3)
    assert out3.shape == (B3, D_OUT)
    assert jnp.allclose(out3, ref3, atol=3e-2, rtol=3e-2)

    print("KERNEL_OK")
</pallas_src>

<mosaic_0001>
module attributes {stable_mosaic.version = 11 : i64} {
  func.func @_bahar_ff_kernel(%arg0: i32, %arg1: memref<32x8xbf16, #tpu.memory_space<vmem>>, %arg2: memref<64x32xbf16, #tpu.memory_space<vmem>>, %arg3: memref<64x1xf32, #tpu.memory_space<vmem>>, %arg4: memref<48x64xbf16, #tpu.memory_space<vmem>>, %arg5: memref<48x1xf32, #tpu.memory_space<vmem>>, %arg6: memref<16x48xbf16, #tpu.memory_space<vmem>>, %arg7: memref<16x1xf32, #tpu.memory_space<vmem>>, %arg8: memref<16x8xf32, #tpu.memory_space<vmem>>) attributes {dimension_semantics = [#tpu.dimension_semantics<parallel>], iteration_bounds = array<i64: 1>, scalar_prefetch = 0 : i64, scratch_operands = 0 : i64, tpu.core_type = #tpu.core_type<tc>, window_params = [{transform_indices = @transform_0, window_bounds = array<i64: 32, 8>}, {pipeline_mode = #tpu.pipeline_mode<synchronous>, transform_indices = @transform_1, window_bounds = array<i64: 64, 32>}, {pipeline_mode = #tpu.pipeline_mode<synchronous>, transform_indices = @transform_2, window_bounds = array<i64: 64, 1>}, {pipeline_mode = #tpu.pipeline_mode<synchronous>, transform_indices = @transform_3, window_bounds = array<i64: 48, 64>}, {pipeline_mode = #tpu.pipeline_mode<synchronous>, transform_indices = @transform_4, window_bounds = array<i64: 48, 1>}, {pipeline_mode = #tpu.pipeline_mode<synchronous>, transform_indices = @transform_5, window_bounds = array<i64: 16, 48>}, {pipeline_mode = #tpu.pipeline_mode<synchronous>, transform_indices = @transform_6, window_bounds = array<i64: 16, 1>}, {transform_indices = @transform_7, window_bounds = array<i64: 16, 8>}]} {
    %c0 = arith.constant 0 : index
    %c0_0 = arith.constant 0 : index
    %0 = vector.load %arg1[%c0, %c0_0] : memref<32x8xbf16, #tpu.memory_space<vmem>>, vector<32x8xbf16>
    %c0_1 = arith.constant 0 : index
    %c0_2 = arith.constant 0 : index
    %1 = vector.load %arg2[%c0_1, %c0_2] : memref<64x32xbf16, #tpu.memory_space<vmem>>, vector<64x32xbf16>
    %c0_3 = arith.constant 0 : index
    %c0_4 = arith.constant 0 : index
    %2 = vector.load %arg4[%c0_3, %c0_4] : memref<48x64xbf16, #tpu.memory_space<vmem>>, vector<48x64xbf16>
    %c0_5 = arith.constant 0 : index
    %c0_6 = arith.constant 0 : index
    %3 = vector.load %arg6[%c0_5, %c0_6] : memref<16x48xbf16, #tpu.memory_space<vmem>>, vector<16x48xbf16>
    %c0_7 = arith.constant 0 : index
    %c0_8 = arith.constant 0 : index
    %4 = vector.load %arg3[%c0_7, %c0_8] : memref<64x1xf32, #tpu.memory_space<vmem>>, vector<64x1xf32>
    %c0_9 = arith.constant 0 : index
    %c0_10 = arith.constant 0 : index
    %5 = vector.load %arg5[%c0_9, %c0_10] : memref<48x1xf32, #tpu.memory_space<vmem>>, vector<48x1xf32>
    %c0_11 = arith.constant 0 : index
    %c0_12 = arith.constant 0 : index
    %6 = vector.load %arg7[%c0_11, %c0_12] : memref<16x1xf32, #tpu.memory_space<vmem>>, vector<16x1xf32>
    %cst = arith.constant dense<0.000000e+00> : vector<64x8xf32>
    %7 = tpu.matmul %1, %0, %cst {dimension_numbers = #tpu.dot_dimension_numbers<[1], [0], [0], [1], [0, 0, 1, 1], [], []>} : vector<64x32xbf16>, vector<32x8xbf16>, vector<64x8xf32> -> vector<64x8xf32>
    %8 = vector.broadcast %4 : vector<64x1xf32> to vector<64x8xf32>
    %9 = arith.addf %7, %8 : vector<64x8xf32>
    %cst_13 = arith.constant 5.000000e-01 : f32
    %10 = vector.broadcast %cst_13 : f32 to vector<64x8xf32>
    %11 = arith.mulf %10, %9 : vector<64x8xf32>
    %12 = math.tanh %11 : vector<64x8xf32>
    %cst_14 = arith.constant 1.000000e+00 : f32
    %13 = vector.broadcast %cst_14 : f32 to vector<64x8xf32>
    %14 = arith.addf %12, %13 : vector<64x8xf32>
    %cst_15 = arith.constant 5.000000e-01 : f32
    %15 = vector.broadcast %cst_15 : f32 to vector<64x8xf32>
    %16 = arith.mulf %15, %14 : vector<64x8xf32>
    %17 = arith.truncf %16 : vector<64x8xf32> to vector<64x8xbf16>
    %cst_16 = arith.constant dense<0.000000e+00> : vector<48x8xf32>
    %18 = tpu.matmul %2, %17, %cst_16 {dimension_numbers = #tpu.dot_dimension_numbers<[1], [0], [0], [1], [0, 0, 1, 1], [], []>} : vector<48x64xbf16>, vector<64x8xbf16>, vector<48x8xf32> -> vector<48x8xf32>
    %19 = vector.broadcast %5 : vector<48x1xf32> to vector<48x8xf32>
    %20 = arith.addf %18, %19 : vector<48x8xf32>
    %cst_17 = arith.constant 5.000000e-01 : f32
    %21 = vector.broadcast %cst_17 : f32 to vector<48x8xf32>
    %22 = arith.mulf %21, %20 : vector<48x8xf32>
    %23 = math.tanh %22 : vector<48x8xf32>
    %cst_18 = arith.constant 1.000000e+00 : f32
    %24 = vector.broadcast %cst_18 : f32 to vector<48x8xf32>
    %25 = arith.addf %23, %24 : vector<48x8xf32>
    %cst_19 = arith.constant 5.000000e-01 : f32
    %26 = vector.broadcast %cst_19 : f32 to vector<48x8xf32>
    %27 = arith.mulf %26, %25 : vector<48x8xf32>
    %28 = arith.truncf %27 : vector<48x8xf32> to vector<48x8xbf16>
    %cst_20 = arith.constant dense<0.000000e+00> : vector<16x8xf32>
    %29 = tpu.matmul %3, %28, %cst_20 {dimension_numbers = #tpu.dot_dimension_numbers<[1], [0], [0], [1], [0, 0, 1, 1], [], []>} : vector<16x48xbf16>, vector<48x8xbf16>, vector<16x8xf32> -> vector<16x8xf32>
    %30 = vector.broadcast %6 : vector<16x1xf32> to vector<16x8xf32>
    %31 = arith.addf %29, %30 : vector<16x8xf32>
    %c0_21 = arith.constant 0 : index
    %c0_22 = arith.constant 0 : index
    %32 = vector.load %arg8[%c0_21, %c0_22] : memref<16x8xf32, #tpu.memory_space<vmem>>, vector<16x8xf32>
    tpu.vector_store %arg8[%c0_21, %c0_22], %31 {strides = array<i32>} : memref<16x8xf32, #tpu.memory_space<vmem>>, vector<16x8xf32>,
    return
  }
  func.func @transform_0(%arg0: i32) -> (i32, i32) {
    %c0_i32 = arith.constant 0 : i32
    %c0_i32_0 = arith.constant 0 : i32
    return %c0_i32, %arg0 : i32, i32
  }
  func.func @transform_1(%arg0: i32) -> (i32, i32) {
    %c0_i32 = arith.constant 0 : i32
    %c0_i32_0 = arith.constant 0 : i32
    %c0_i32_1 = arith.constant 0 : i32
    return %c0_i32, %c0_i32_0 : i32, i32
  }
  func.func @transform_2(%arg0: i32) -> (i32, i32) {
    %c0_i32 = arith.constant 0 : i32
    %c0_i32_0 = arith.constant 0 : i32
    %c0_i32_1 = arith.constant 0 : i32
    return %c0_i32, %c0_i32_0 : i32, i32
  }
  func.func @transform_3(%arg0: i32) -> (i32, i32) {
    %c0_i32 = arith.constant 0 : i32
    %c0_i32_0 = arith.constant 0 : i32
    %c0_i32_1 = arith.constant 0 : i32
    return %c0_i32, %c0_i32_0 : i32, i32
  }
  func.func @transform_4(%arg0: i32) -> (i32, i32) {
    %c0_i32 = arith.constant 0 : i32
    %c0_i32_0 = arith.constant 0 : i32
    %c0_i32_1 = arith.constant 0 : i32
    return %c0_i32, %c0_i32_0 : i32, i32
  }
  func.func @transform_5(%arg0: i32) -> (i32, i32) {
    %c0_i32 = arith.constant 0 : i32
    %c0_i32_0 = arith.constant 0 : i32
    %c0_i32_1 = arith.constant 0 : i32
    return %c0_i32, %c0_i32_0 : i32, i32
  }
  func.func @transform_6(%arg0: i32) -> (i32, i32) {
    %c0_i32 = arith.constant 0 : i32
    %c0_i32_0 = arith.constant 0 : i32
    %c0_i32_1 = arith.constant 0 : i32
    return %c0_i32, %c0_i32_0 : i32, i32
  }
  func.func @transform_7(%arg0: i32) -> (i32, i32) {
    %c0_i32 = arith.constant 0 : i32
    %c0_i32_0 = arith.constant 0 : i32
    return %c0_i32, %arg0 : i32, i32
  }
}

</mosaic_0001>

<bundles_post_ra>
// kernel: bahar_ff.1
= control target key start
LH: loop header
LB: loop body
LE: loop exit
PB: predicated region body
PF: predicated region fallthrough
CT: control target
= control target key end

     0   :  { %v455_v1 = vmov 0   ;;  %vm135_vm0 = vcmask 261120   ;;  %vm258_vm1 = vcmask 523264   ;;  %vm334_vm2 = vcmask 392192   ;;  %s584_s0 = inlined_call_operand.vmem [shape: bf16[32,8], index: 0, kind: input, shape index: {}]   ;;  %s585_s2 = inlined_call_operand.vmem [shape: f32[64,1], index: 2, kind: input, shape index: {}]   ;;  %s586_s1 = inlined_call_operand.vmem [shape: bf16[64,32], index: 1, kind: input, shape index: {}]   ;;  %s587_s4 = inlined_call_operand.vmem [shape: f32[48,1], index: 4, kind: input, shape index: {}]   ;;  %s588_s6 = inlined_call_operand.vmem [shape: f32[16,1], index: 6, kind: input, shape index: {}]   ;;  %s589_s3 = inlined_call_operand.vmem [shape: bf16[48,64], index: 3, kind: input, shape index: {}]   ;;  %s590_s5 = inlined_call_operand.vmem [shape: bf16[16,48], index: 5, kind: input, shape index: {}]   ;;  %s591_s7 = inlined_call_operand.vmem [shape: f32[16,8], index: 7, kind: output, shape index: {}]  }
   0x1   :  { %v408_v0 = vld [vmem:[%s584_s0 + $0x8] sm:$0xff]  ;;  %424 = vset.pattern.permute.xlu0 %v455_v1  ;;  %425 = vset.pattern.permute.xlu1 %v455_v1  ;;  %v53_v2 = vld [vmem:[%s585_s2 + $0x30] sm:$0xff]  ;;  %v407_v3 = vld [vmem:[%s584_s0] sm:$0xff]  ;;  %vm352_vm3 = vcmask 64512  }
   0x2   :  { %426 = vset.pattern.permute.xlu2 %v455_v1  ;;  %417 = vmatpush.bf16.msra.mxu3 %v408_v0  ;;  %v51_v4 = vld [vmem:[%s585_s2 + $0x20] sm:$0xff]  ;;  %v410_v5 = vld [vmem:[%s586_s1 + $0x8] sm:$0xff]  ;;  %v54_v7 = vld [vmem:[%s585_s2 + $0x38] sm:$0xff] }
   0x3   :  { %95 = vperm.xlu0 %424, %v53_v2   ;;  %85 = vperm.xlu1 %425, %v51_v4   ;;  %v409_v6 = vld [vmem:[%s586_s1] sm:$0xff]  ;;  %v52_v8 = vld [vmem:[%s585_s2 + $0x28] sm:$0xff]  ;;  %v49_v9 = vld [vmem:[%s585_s2 + $0x10] sm:$0xff] }
   0x4   :  { %154 = vmatpush.bf16.msra.mxu0 %v408_v0  ;;  %75 = vperm.xlu2 %426, %v49_v9   ;;  %v47_v10 = vld [vmem:[%s585_s2] sm:$0xff]  ;;  %v48_v11 = vld [vmem:[%s585_s2 + $0x8] sm:$0xff]  ;;  %v50_v12 = vld [vmem:[%s585_s2 + $0x18] sm:$0xff] }
   0x5   :  { %v411_v13 = vld [vmem:[%s586_s1 + $0x10] sm:$0xff]  ;;  %v60_v14 = vld [vmem:[%s587_s4 + $0x28] sm:$0xff]  ;;  %v59_v16 = vld [vmem:[%s587_s4 + $0x20] sm:$0xff] }
   0x6   :  { %418 = vmatpush.bf16.msra.mxu3 %v407_v3  ;;  %v57_v15 = vld [vmem:[%s587_s4 + $0x10] sm:$0xff]  ;;  %v55_v17 = vld [vmem:[%s587_s4] sm:$0xff]  ;;  %v56_v18 = vld [vmem:[%s587_s4 + $0x8] sm:$0xff] }
   0x7   :  { %v58_v19 = vld [vmem:[%s587_s4 + $0x18] sm:$0xff]  ;;  %v62_v21 = vld [vmem:[%s588_s6 + $0x8] sm:$0xff]  ;;  %v61_v22 = vld [vmem:[%s588_s6] sm:$0xff] }
   0x8   :  { %155 = vmatpush.bf16.msra.mxu0 %v407_v3  ;;  %v412_v20 = vld [vmem:[%s586_s1 + $0x18] sm:$0xff] }
   0x9   :  { %384 = vmatmul.msk.bf16.vlgmr.msra.gmra.mxu3 %vm135_vm0, %v410_v5 }
   0xb   :  { %100 = vperm.xlu0 %424, %v54_v7   ;;  %383 = vmatmul.msk.bf16.vlgmr.msra.gmra.mxu0 %vm135_vm0, %v409_v6 }
   0xc   :  { %90 = vperm.xlu1 %425, %v52_v8   ;;  %80 = vperm.xlu2 %426, %v50_v12  }
  0x13   :  { %65 = vperm.xlu0 %424, %v47_v10  }
  0x14   :  { %70 = vperm.xlu1 %425, %v48_v11   ;;  %235 = vperm.xlu2 %426, %v59_v16  }
  0x19   :  { %385 = vmatmul.msk.bf16.gmra.mxu3 %vm135_vm0, %v411_v13 }
  0x1b   :  { %240 = vperm.xlu0 %424, %v60_v14  }
  0x1c   :  { %225 = vperm.xlu1 %425, %v57_v15   ;;  %230 = vperm.xlu2 %426, %v58_v19   ;;  %v413_v19 = vld [vmem:[%s589_s3] sm:$0xff] }
  0x23   :  { %215 = vperm.xlu0 %424, %v55_v17  }
  0x24   :  { %220 = vperm.xlu1 %425, %v56_v18   ;;  %321 = vperm.xlu2 %426, %v61_v22  }
  0x29   :  { %386 = vmatmul.msk.bf16.gmra.mxu3 %vm135_vm0, %v412_v20  ;;  %v414_v20 = vld [vmem:[%s589_s3 + $0x8] sm:$0xff] }
  0x2b   :  { %326 = vperm.xlu0 %424, %v62_v21   ;;  %v415_v21 = vld [vmem:[%s589_s3 + $0x10] sm:$0xff] }
  0x5e   :  { %v76_v29 = vpop.permute.xlu2 %75 }
  0x66   :  { %v81_v36 = vpop.permute.xlu2 %80 }
  0x75   :  { %v96_v26 = vpop.permute.xlu0 %95  ;;  %v86_v27 = vpop.permute.xlu1 %85 }
  0x7d   :  { %v101_v31 = vpop.permute.xlu0 %100 }
  0x7e   :  { %v91_v32 = vpop.permute.xlu1 %90 }
  0x85   :  { %v66_v45 = vpop.permute.xlu0 %65 }
  0x86   :  { %v71_v47 = vpop.permute.xlu1 %70 }
  0x88   :  { %v157_v30 = vpop.f32.mrf.mxu0 }
  0x89   :  { %v158_v48 = vadd.f32 %v157_v30, %v66_v45 }
  0x8b   :  { %v177_v53 = vmul.f32 0.5, %v158_v48 }
  0x8c   :  { %v162_v23 = vpop.f32.mrf.mxu3 }
  0x8d   :  { %v163_v44 = vadd.f32 %v162_v23, %v76_v29  ;;  %v236_v23 = vpop.permute.xlu2 %235 }
  0x8f   :  { %v179_v52 = vmul.f32 0.5, %v163_v44 }
  0x90   :  { %v159_v42 = vpop.f32.mrf.mxu0 }
  0x91   :  { %v160_v50 = vadd.f32 %v159_v42, %v71_v47 }
  0x93   :  { %v178_v55 = vmul.f32 0.5, %v160_v50 }
  0x94   :  { %v164_v24 = vpop.f32.mrf.mxu3 }
  0x95   :  { %v165_v39 = vadd.f32 %v164_v24, %v81_v36  ;;  %v231_v30 = vpop.permute.xlu2 %230 }
  0x97   :  { %v180_v49 = vmul.f32 0.5, %v165_v39 }
  0x9c   :  { %v167_v25 = vpop.f32.mrf.mxu3 }
  0x9d   :  { %v168_v37 = vadd.f32 %v167_v25, %v86_v27  ;;  %v241_v27 = vpop.permute.xlu0 %240 }
  0x9f   :  { %v181_v41 = vmul.f32 0.5, %v168_v37 }
  0xa4   :  { %v169_v28 = vpop.f32.mrf.mxu3 }
  0xa5   :  { %v170_v35 = vadd.f32 %v169_v28, %v91_v32 }
  0xa7   :  { %v182_v40 = vmul.f32 0.5, %v170_v35 }
  0xac   :  { %v172_v33 = vpop.f32.mrf.mxu3 }
  0xad   :  { %v173_v34 = vadd.f32 %v172_v33, %v96_v26  ;;  %v226_v26 = vpop.permute.xlu1 %225 }
  0xaf   :  { %v183_v38 = vmul.f32 0.5, %v173_v34 }
  0xb1   :  { %427 = vtanh.f32 %v183_v38  ;;  %v216_v38 = vpop.permute.xlu0 %215 }
  0xb2   :  { %429 = vtanh.f32 %v182_v40 }
  0xb3   :  { %431 = vtanh.f32 %v181_v41 }
  0xb4   :  { %v174_v43 = vpop.f32.mrf.mxu3 }
  0xb5   :  { %v175_v46 = vadd.f32 %v174_v43, %v101_v31  ;;  %v221_v35 = vpop.permute.xlu1 %220 }
  0xb7   :  { %v184_v51 = vmul.f32 0.5, %v175_v46  ;;  %v428_v54 = vpop.eup %427 }
  0xb8   :  { %v430_v56 = vpop.eup %429  ;;  %v199_v58 = vadd.f32 1.0, %v428_v54 }
  0xb9   :  { %433 = vtanh.f32 %v184_v51  ;;  %v432_v57 = vpop.eup %431  ;;  %v198_v60 = vadd.f32 1.0, %v430_v56 }
  0xba   :  { %435 = vtanh.f32 %v180_v49  ;;  %v197_v63 = vadd.f32 1.0, %v432_v57  ;;  %v207_v0 = vmul.f32 0.5, %v199_v58 }
  0xbb   :  { %437 = vtanh.f32 %v179_v52  ;;  %v206_v6 = vmul.f32 0.5, %v198_v60 }
  0xbc   :  { %439 = vtanh.f32 %v177_v53  ;;  %v205_v9 = vmul.f32 0.5, %v197_v63 }
  0xbd   :  { %441 = vtanh.f32 %v178_v55 }
  0xbe   :  { %v211_v12 = vpack.c.bf16 %v206_v6, %v205_v9 }
  0xbf   :  { %v434_v59 = vpop.eup %433 }
  0xc0   :  { %v200_v61 = vadd.f32 1.0, %v434_v59  ;;  %v436_v62 = vpop.eup %435 }
  0xc1   :  { %v438_v2 = vpop.eup %437  ;;  %v196_v4 = vadd.f32 1.0, %v436_v62 }
  0xc2   :  { %v208_v1 = vmul.f32 0.5, %v200_v61  ;;  %v440_v3 = vpop.eup %439  ;;  %v195_v8 = vadd.f32 1.0, %v438_v2 }
  0xc3   :  { %v442_v7 = vpop.eup %441  ;;  %v193_v10 = vadd.f32 1.0, %v440_v3  ;;  %v204_v13 = vmul.f32 0.5, %v196_v4  ;;  %v416_v3 = vld [vmem:[%s590_s5] sm:$0xff]  ;;  %v322_v4 = vpop.permute.xlu2 %321 }
  0xc4   :  { %v212_v5 = vpack.c.bf16 %v208_v1, %v207_v0  ;;  %v194_v11 = vadd.f32 1.0, %v442_v7  ;;  %v203_v14 = vmul.f32 0.5, %v195_v8  ;;  %v327_v7 = vpop.permute.xlu0 %326 }
  0xc5   :  { %v201_v16 = vmul.f32 0.5, %v193_v10 }
  0xc6   :  { %272 = vmatpush.bf16.msrb.mxu0 %v212_v5  ;;  %419 = vmatpush.bf16.msra.mxu1 %v212_v5  ;;  %v210_v15 = vpack.c.bf16 %v204_v13, %v203_v14  ;;  %v202_v17 = vmul.f32 0.5, %v194_v11 }
  0xc8   :  { %v209_v18 = vpack.c.bf16 %v202_v17, %v201_v16 }
  0xca   :  { %273 = vmatpush.bf16.msrb.mxu0 %v211_v12  ;;  %420 = vmatpush.bf16.msra.mxu1 %v211_v12 }
  0xce   :  { %274 = vmatpush.bf16.msrb.mxu0 %v210_v15  ;;  %421 = vmatpush.bf16.msra.mxu1 %v210_v15 }
  0xd2   :  { %275 = vmatpush.bf16.msrb.mxu0 %v209_v18  ;;  %422 = vmatpush.bf16.msra.mxu1 %v209_v18 }
  0xd5   :  { %399 = vmatmul.msk.bf16.vlgmr.msrb.gmra.mxu0 %vm258_vm1, %v413_v19  ;;  %400 = vmatmul.msk.bf16.vlgmr.msra.gmra.mxu1 %vm258_vm1, %v414_v20 }
  0xe5   :  { %401 = vmatmul.msk.bf16.gmra.mxu1 %vm258_vm1, %v415_v21 }
 0x152   :  { %v282_v22 = vpop.f32.mrf.mxu1  ;;  %v277_v25 = vpop.f32.mrf.mxu0 }
 0x153   :  { %v283_v32 = vadd.f32 %v282_v22, %v226_v26  ;;  %v278_v41 = vadd.f32 %v277_v25, %v216_v38 }
 0x155   :  { %v294_v39 = vmul.f32 0.5, %v283_v32  ;;  %v292_v45 = vmul.f32 0.5, %v278_v41 }
 0x15a   :  { %v284_v24 = vpop.f32.mrf.mxu1  ;;  %v279_v33 = vpop.f32.mrf.mxu0 }
 0x15b   :  { %v285_v31 = vadd.f32 %v284_v24, %v231_v30  ;;  %v280_v36 = vadd.f32 %v279_v33, %v221_v35 }
 0x15d   :  { %v295_v37 = vmul.f32 0.5, %v285_v31  ;;  %v293_v43 = vmul.f32 0.5, %v280_v36 }
 0x162   :  { %v287_v28 = vpop.f32.mrf.mxu1 }
 0x163   :  { %v288_v29 = vadd.f32 %v287_v28, %v236_v23 }
 0x165   :  { %v296_v34 = vmul.f32 0.5, %v288_v29 }
 0x167   :  { %443 = vtanh.f32 %v296_v34 }
 0x168   :  { %445 = vtanh.f32 %v295_v37 }
 0x169   :  { %447 = vtanh.f32 %v294_v39 }
 0x16a   :  { %v289_v40 = vpop.f32.mrf.mxu1 }
 0x16b   :  { %v290_v42 = vadd.f32 %v289_v40, %v241_v27 }
 0x16d   :  { %v297_v44 = vmul.f32 0.5, %v290_v42  ;;  %v444_v46 = vpop.eup %443 }
 0x16e   :  { %v446_v47 = vpop.eup %445  ;;  %v308_v49 = vadd.f32 1.0, %v444_v46 }
 0x16f   :  { %449 = vtanh.f32 %v297_v44  ;;  %v448_v48 = vpop.eup %447  ;;  %v307_v51 = vadd.f32 1.0, %v446_v47 }
 0x170   :  { %451 = vtanh.f32 %v293_v43  ;;  %v306_v54 = vadd.f32 1.0, %v448_v48  ;;  %v314_v55 = vmul.f32 0.5, %v308_v49 }
 0x171   :  { %453 = vtanh.f32 %v292_v45  ;;  %v313_v60 = vmul.f32 0.5, %v307_v51 }
 0x172   :  { %v312_v62 = vmul.f32 0.5, %v306_v54 }
 0x174   :  { %v317_v63 = vpack.c.bf16 %v313_v60, %v312_v62 }
 0x175   :  { %v450_v50 = vpop.eup %449 }
 0x176   :  { %v309_v52 = vadd.f32 1.0, %v450_v50  ;;  %v452_v53 = vpop.eup %451 }
 0x177   :  { %v454_v57 = vpop.eup %453  ;;  %v305_v58 = vadd.f32 1.0, %v452_v53 }
 0x178   :  { %v315_v56 = vmul.f32 0.5, %v309_v52  ;;  %v304_v61 = vadd.f32 1.0, %v454_v57 }
 0x179   :  { %v311_v0 = vmul.f32 0.5, %v305_v58 }
 0x17a   :  { %v318_v59 = vpack.c.bf16 %v315_v56, %v314_v55  ;;  %v310_v1 = vmul.f32 0.5, %v304_v61 }
 0x17c   :  { %343 = vmatpush.bf16.msra.mxu2 %v318_v59  ;;  %v316_v2 = vpack.c.bf16 %v311_v0, %v310_v1 }
 0x180   :  { %344 = vmatpush.bf16.msra.mxu2 %v317_v63 }
 0x184   :  { %345 = vmatpush.bf16.msra.mxu2 %v316_v2 }
 0x187   :  { %406 = vmatmul.msk.bf16.vlgmr.msra.gmra.mxu2 %vm334_vm2, %v416_v3 }
 0x20a   :  { %v347_v5 = vpop.f32.mrf.mxu2 }
 0x20b   :  { %v348_v6 = vadd.f32 %v347_v5, %v322_v4 }
 0x20d   :  { %353 = vst.msk [vmem:[%s591_s7] sm:$0xff] %vm352_vm3, %v348_v6 }
 0x212   :  { %v349_v8 = vpop.f32.mrf.mxu2 }
 0x213   :  { %v350_v9 = vadd.f32 %v349_v8, %v327_v7 }
 0x215   :  { %354 = vst.msk [vmem:[%s591_s7 + $0x8] sm:$0xff] %vm352_vm3, %v350_v9 }

</bundles_post_ra>
